<compile_context>
chip_gen: v6e
topology: v6e:2x2x1
jax: 0.10.0
libtpu: 0.0.40
codegen_flags: <defaults>
</compile_context>

<pallas_src>
import math

import jax
import jax.numpy as jnp
from jax.experimental import pallas as pl
from jax.experimental.pallas import tpu as pltpu


def _round_down(x, m):
    return (x // m) * m


def _working_set_budget_bytes():
    """Target for the total double-buffered VMEM working set per grid step."""
    try:
        cap = int(pltpu.get_tpu_info().vmem_capacity_bytes)
    except Exception:
        cap = 64 << 20  # conservative: v7x physical VMEM per TensorCore
    # Keep the whole pipeline (2x inputs + 2x output) under ~1/4 of physical
    # VMEM: 16 MiB on v7x, 32 MiB on v5e/v6e.
    return max(4 << 20, min(cap // 4, 32 << 20))


def concat(xs, dimension=1):
    """Equivalent of torch.cat(xs, dim=dimension) for same-rank JAX arrays."""
    xs = list(xs)
    assert len(xs) >= 1
    nd = xs[0].ndim
    d = dimension % nd
    dtype = xs[0].dtype
    for x in xs:
        assert x.ndim == nd and x.dtype == dtype
        for ax in range(nd):
            if ax != d:
                assert x.shape[ax] == xs[0].shape[ax]
    if len(xs) == 1:
        return xs[0]

    cs = [int(x.shape[d]) for x in xs]
    c_total = sum(cs)
    out_shape = list(xs[0].shape)
    out_shape[d] = c_total
    out_shape = tuple(out_shape)

    # Canonical view: (outer, C_i, inner) with the concat axis in the middle
    # and all trailing axes flattened (row-major reshapes are free).
    outer = math.prod(xs[0].shape[:d]) if d > 0 else 1
    inner = math.prod(xs[0].shape[d + 1:]) if d < nd - 1 else 1
    itemsize = jnp.dtype(dtype).itemsize

    if inner == 1:
        # TODO(synk): last-axis concat with unaligned channel offsets would
        # produce ~1-of-128-lane masked stores; XLA's native concat wins here.
        return jnp.concatenate(xs, axis=d)

    offsets = []
    off = 0
    for c in cs:
        offsets.append(off)
        off += c

    total_bytes = 2 * outer * c_total * inner * itemsize  # read + write
    cost = pl.CostEstimate(flops=0, transcendentals=0,
                           bytes_accessed=total_bytes)

    ws_budget = _working_set_budget_bytes()
    block_budget = ws_budget // 4  # bytes for ONE output block (double-buffered x2 ops)
    row_bytes = c_total * inner * itemsize

    # ---------- Path A: lane-dense 2-D layout, tile the outer axis ----------
    use_2d = False
    t_outer = 0
    if inner % 128 == 0:
        t_outer = block_budget // row_bytes
        if t_outer >= outer:
            t_outer = outer            # whole array in one (or few) blocks
            use_2d = True
        elif t_outer >= 8:
            t_outer = _round_down(t_outer, 8)  # sublane-aligned row blocks
            use_2d = True
        # else: one output row is already near the budget -> tile inner (Path B).

    if use_2d:
        widths = [c * inner for c in cs]
        w_offs = [o * inner for o in offsets]       # multiples of 128
        w_total = c_total * inner
        xs2 = [x.reshape(outer, w) for x, w in zip(xs, widths)]

        grid = (pl.cdiv(outer, t_outer),)
        in_specs = [pl.BlockSpec((t_outer, w), lambda i: (i, 0)) for w in widths]
        out_specs = pl.BlockSpec((t_outer, w_total), lambda i: (i, 0))

        def kernel2d(*refs):
            *in_refs, o_ref = refs
            for r, o0, w in zip(in_refs, w_offs, widths):
                o_ref[:, o0:o0 + w] = r[...]   # unmasked, 128-aligned lane slabs

        ws_bytes = 4 * w_total * t_outer * itemsize
        out = pl.pallas_call(
            kernel2d,
            out_shape=jax.ShapeDtypeStruct((outer, w_total), dtype),
            grid=grid,
            in_specs=in_specs,
            out_specs=out_specs,
            compiler_params=pltpu.CompilerParams(
                dimension_semantics=("parallel",),
                vmem_limit_bytes=int(max(2 * ws_bytes, 16 << 20))),
            cost_estimate=cost,
        )(*xs2)
        return out.reshape(out_shape)

    # ---------- Path B: bounded 3-D layout, tile outer AND inner ----------
    xs3 = [x.reshape(outer, c, inner) for x, c in zip(xs, cs)]

    if inner < 128:
        t_inner = inner                               # full (and only) lane tile
    else:
        t_inner = max(128, _round_down(block_budget // (c_total * itemsize), 128))
        if inner % 128 == 0:
            t_inner = min(t_inner, inner)
        else:
            t_inner = min(t_inner, _round_down(inner, 128))  # ragged last tile

    t_b = max(1, block_budget // (c_total * t_inner * itemsize))
    t_b = min(t_b, outer)
    if t_b >= 8:
        t_b = _round_down(t_b, 8)

    grid = (pl.cdiv(outer, t_b), pl.cdiv(inner, t_inner))
    in_specs = [pl.BlockSpec((t_b, c, t_inner), lambda i, j: (i, 0, j)) for c in cs]
    out_specs = pl.BlockSpec((t_b, c_total, t_inner), lambda i, j: (i, 0, j))

    def kernel3d(*refs):
        *in_refs, o_ref = refs
        for r, o0, c in zip(in_refs, offsets, cs):
            o_ref[:, o0:o0 + c, :] = r[...]

    ws_bytes = 4 * c_total * t_b * t_inner * itemsize
    out = pl.pallas_call(
        kernel3d,
        out_shape=jax.ShapeDtypeStruct((outer, c_total, inner), dtype),
        grid=grid,
        in_specs=in_specs,
        out_specs=out_specs,
        compiler_params=pltpu.CompilerParams(
            dimension_semantics=("parallel", "parallel"),
            vmem_limit_bytes=int(max(2 * ws_bytes, 16 << 20))),
        cost_estimate=cost,
    )(*xs3)
    return out.reshape(out_shape)


if __name__ == "__main__":
    key = jax.random.PRNGKey(0)
    k1, k2, k3, k4 = jax.random.split(key, 4)
    x1 = jax.random.normal(k1, (2, 4, 16, 16), jnp.float32)
    x2 = jax.random.normal(k2, (2, 8, 16, 16), jnp.float32)
    x3 = jax.random.normal(k3, (2, 4, 16, 16), jnp.float32)

    # YOLOv8-style channel concat (dim=1): lane-dense 2-D path (inner = 256).
    out = jax.block_until_ready(concat([x1, x2, x3], dimension=1))
    assert out.shape == (2, 16, 16, 16), out.shape
    ref = jnp.concatenate([x1, x2, x3], axis=1)
    assert jnp.array_equal(out, ref), float(jnp.max(jnp.abs(out - ref)))

    # Spatial concat (dim=2): bounded 3-D path (inner = 16, not lane-aligned).
    x4 = jax.random.normal(k4, (2, 4, 8, 16), jnp.float32)
    out2 = jax.block_until_ready(concat([x1, x4], dimension=2))
    assert out2.shape == (2, 4, 24, 16), out2.shape
    ref2 = jnp.concatenate([x1, x4], axis=2)
    assert jnp.array_equal(out2, ref2), float(jnp.max(jnp.abs(out2 - ref2)))

    print("KERNEL_OK")
</pallas_src>

<mosaic_0001>
module attributes {stable_mosaic.version = 11 : i64} {
  func.func @kernel2d(%arg0: i32, %arg1: memref<2x1024xf32, #tpu.memory_space<vmem>>, %arg2: memref<2x2048xf32, #tpu.memory_space<vmem>>, %arg3: memref<2x1024xf32, #tpu.memory_space<vmem>>, %arg4: memref<2x4096xf32, #tpu.memory_space<vmem>>) attributes {dimension_semantics = [#tpu.dimension_semantics<parallel>], iteration_bounds = array<i64: 1>, scalar_prefetch = 0 : i64, scratch_operands = 0 : i64, tpu.core_type = #tpu.core_type<tc>, window_params = [{transform_indices = @transform_0, window_bounds = array<i64: 2, 1024>}, {transform_indices = @transform_1, window_bounds = array<i64: 2, 2048>}, {transform_indices = @transform_2, window_bounds = array<i64: 2, 1024>}, {transform_indices = @transform_3, window_bounds = array<i64: 2, 4096>}]} {
    %c0 = arith.constant 0 : index
    %c0_0 = arith.constant 0 : index
    %0 = vector.load %arg1[%c0, %c0_0] : memref<2x1024xf32, #tpu.memory_space<vmem>>, vector<2x1024xf32>
    %c0_1 = arith.constant 0 : index
    %c0_2 = arith.constant 0 : index
    %1 = vector.load %arg4[%c0_1, %c0_2] : memref<2x4096xf32, #tpu.memory_space<vmem>>, vector<2x1024xf32>
    tpu.vector_store %arg4[%c0_1, %c0_2], %0 {strides = array<i32>} : memref<2x4096xf32, #tpu.memory_space<vmem>>, vector<2x1024xf32>,
    %c0_3 = arith.constant 0 : index
    %c0_4 = arith.constant 0 : index
    %2 = vector.load %arg2[%c0_3, %c0_4] : memref<2x2048xf32, #tpu.memory_space<vmem>>, vector<2x2048xf32>
    %c0_5 = arith.constant 0 : index
    %c1024 = arith.constant 1024 : index
    %3 = vector.load %arg4[%c0_5, %c1024] : memref<2x4096xf32, #tpu.memory_space<vmem>>, vector<2x2048xf32>
    tpu.vector_store %arg4[%c0_5, %c1024], %2 {strides = array<i32>} : memref<2x4096xf32, #tpu.memory_space<vmem>>, vector<2x2048xf32>,
    %c0_6 = arith.constant 0 : index
    %c0_7 = arith.constant 0 : index
    %4 = vector.load %arg3[%c0_6, %c0_7] : memref<2x1024xf32, #tpu.memory_space<vmem>>, vector<2x1024xf32>
    %c0_8 = arith.constant 0 : index
    %c3072 = arith.constant 3072 : index
    %5 = vector.load %arg4[%c0_8, %c3072] : memref<2x4096xf32, #tpu.memory_space<vmem>>, vector<2x1024xf32>
    tpu.vector_store %arg4[%c0_8, %c3072], %4 {strides = array<i32>} : memref<2x4096xf32, #tpu.memory_space<vmem>>, vector<2x1024xf32>,
    return
  }
  func.func @transform_0(%arg0: i32) -> (i32, i32) {
    %c0_i32 = arith.constant 0 : i32
    %c0_i32_0 = arith.constant 0 : i32
    return %arg0, %c0_i32 : i32, i32
  }
  func.func @transform_1(%arg0: i32) -> (i32, i32) {
    %c0_i32 = arith.constant 0 : i32
    %c0_i32_0 = arith.constant 0 : i32
    return %arg0, %c0_i32 : i32, i32
  }
  func.func @transform_2(%arg0: i32) -> (i32, i32) {
    %c0_i32 = arith.constant 0 : i32
    %c0_i32_0 = arith.constant 0 : i32
    return %arg0, %c0_i32 : i32, i32
  }
  func.func @transform_3(%arg0: i32) -> (i32, i32) {
    %c0_i32 = arith.constant 0 : i32
    %c0_i32_0 = arith.constant 0 : i32
    return %arg0, %c0_i32 : i32, i32
  }
}

</mosaic_0001>

<bundles_post_ra>
// kernel: tpu_custom_call.1
= control target key start
LH: loop header
LB: loop body
LE: loop exit
PB: predicated region body
PF: predicated region fallthrough
CT: control target
= control target key end

     0   :  { %8 = vsyncpa [#allocation3], 0  ;;  %s208_s0 = inlined_call_operand.hbm [shape: f32[2,1024], index: 0, kind: input, shape index: {}]   ;;  %s209_s1 = inlined_call_operand.hbm [shape: f32[2,2048], index: 1, kind: input, shape index: {}]   ;;  %s210_s2 = inlined_call_operand.hbm [shape: f32[2,1024], index: 2, kind: input, shape index: {}]   ;;  %s211_s3 = inlined_call_operand.hbm [shape: f32[2,4096], index: 3, kind: output, shape index: {}]  }
   0x1   :  { %9 = vsyncpa [#allocation6], 0 }
   0x2   :  { %10 = vsyncpa [#allocation4], 0  ;;  %s172_s12 = smov [#allocation5]   ;;  %s173_s14 = smov [#allocation2]  }
   0x3   :  { %s27_s13 = sshll.u32 %s172_s12, 4  ;;  %s17_s15 = sshll.u32 %s173_s14, 4  ;;  %s28_s13 = int_to_ptr.vmem [resolvable:$true] %s27_s13  ;;  %s18_s15 = int_to_ptr.vmem [resolvable:$true] %s17_s15 }
   0x4   :  { %s94_s16 = scalar_lea.vmem %s28_s13, 512  ;;  %p99_p1 = scmp.lt.s32.totalorder %s28_s13, %s28_s13 }
   0x5   :  { %p95_p0 = scmp.ne.s32.totalorder %s28_s13, %s94_s16  ;;  %p100_p2 = scmp.lt.s32.totalorder %s94_s16, %s94_s16 }
   0x7   :  { %p101_p3 = por %p100_p2, %p99_p1 }
   0x9   :  { %p102_p4 = pnand %p101_p3, %p95_p0 }
   0xb   :  { %105 = shalt.err (!%p102_p4)
}
   0xc   :  { %30 = dma.hbm_to_vmem [thread:$0]  %s209_s1, 512, %s28_s13, [#allocation6]  }
   0xd   :  { %s114_s19 = scalar_lea.vmem %s18_s15, 256  ;;  %p119_p6 = scmp.lt.s32.totalorder %s18_s15, %s18_s15 }
   0xe   :  { %p115_p5 = scmp.ne.s32.totalorder %s18_s15, %s114_s19  ;;  %p120_p7 = scmp.lt.s32.totalorder %s114_s19, %s114_s19 }
  0x10   :  { %p121_p8 = por %p120_p7, %p119_p6 }
  0x12   :  { %p122_p9 = pnand %p121_p8, %p115_p5 }
  0x14   :  { %125 = shalt.err (!%p122_p9)
}
  0x15   :  { %20 = dma.hbm_to_vmem [thread:$0]  %s208_s0, 256, %s18_s15, [#allocation3]  }
  0x16   :  { %s174_s22 = smov [#allocation7]  }
  0x17   :  { %s37_s23 = sshll.u32 %s174_s22, 4  ;;  %s38_s23 = int_to_ptr.vmem [resolvable:$true] %s37_s23 }
  0x18   :  { %s134_s24 = scalar_lea.vmem %s38_s23, 256  ;;  %p139_p11 = scmp.lt.s32.totalorder %s38_s23, %s38_s23 }
  0x19   :  { %p135_p10 = scmp.ne.s32.totalorder %s38_s23, %s134_s24  ;;  %p140_p12 = scmp.lt.s32.totalorder %s134_s24, %s134_s24 }
  0x1b   :  { %p141_p13 = por %p140_p12, %p139_p11 }
  0x1d   :  { %p142_p0 = pnand %p141_p13, %p135_p10 }
  0x1f   :  { %145 = shalt.err (!%p142_p0)
}
  0x20   :  { %40 = dma.hbm_to_vmem [thread:$0]  %s210_s2, 256, %s38_s23, [#allocation6]  }
  0x21   :  { %166 = dma.done.wait [#allocation3], 256  }
  0x22   :  { %167 = vsyncadd [#allocation3], 4294967040 }
  0x23   :  { %168 = dma.done.wait [#allocation6], 768  }
  0x24   :  { %169 = vsyncadd [#allocation6], 4294966528  ;;  %s175_s26 = smov [#allocation8]   ;;  %v50_v0 = vld [vmem:[#allocation2] sm:$0xff]  ;;  %v51_v1 = vld [vmem:[#allocation2 + $0x8] sm:$0xff] }
  0x25   :  { %s72_s0 = sshll.u32 %s175_s26, 4  ;;  %v54_v2 = vld [vmem:[#allocation5] sm:$0xff]  ;;  %52 = vst [vmem:[#allocation8] sm:$0xff] %v50_v0  ;;  %53 = vst [vmem:[#allocation8 + $0x8] sm:$0xff] %v51_v1  ;;  %v55_v3 = vld [vmem:[#allocation5 + $0x8] sm:$0xff]  ;;  %s73_s0 = int_to_ptr.vmem [resolvable:$true] %s72_s0 }
  0x26   :  { %58 = vst [vmem:[#allocation8 + $0x10] sm:$0xff] %v54_v2  ;;  %v56_v4 = vld [vmem:[#allocation5 + $0x10] sm:$0xff]  ;;  %v57_v5 = vld [vmem:[#allocation5 + $0x18] sm:$0xff]  ;;  %59 = vst [vmem:[#allocation8 + $0x18] sm:$0xff] %v55_v3  ;;  %s146_s2 = scalar_lea.vmem %s73_s0, 1024  ;;  %p151_p2 = scmp.lt.s32.totalorder %s73_s0, %s73_s0 }
  0x27   :  { %60 = vst [vmem:[#allocation8 + $0x20] sm:$0xff] %v56_v4  ;;  %61 = vst [vmem:[#allocation8 + $0x28] sm:$0xff] %v57_v5  ;;  %v62_v6 = vld [vmem:[#allocation7] sm:$0xff]  ;;  %v63_v7 = vld [vmem:[#allocation7 + $0x8] sm:$0xff]  ;;  %p147_p1 = scmp.ne.s32.totalorder %s73_s0, %s146_s2  ;;  %p152_p3 = scmp.lt.s32.totalorder %s146_s2, %s146_s2 }
  0x28   :  { %64 = vst [vmem:[#allocation8 + $0x30] sm:$0xff] %v62_v6  ;;  %65 = vst [vmem:[#allocation8 + $0x38] sm:$0xff] %v63_v7 }
  0x29   :  { %p153_p4 = por %p152_p3, %p151_p2 }
  0x2b   :  { %p154_p5 = pnand %p153_p4, %p147_p1 }
  0x2d   :  { %157 = shalt.err (!%p154_p5)
}
  0x2e   :  { %75 = dma.vmem_to_hbm [thread:$0]  %s73_s0, 1024, %s211_s3, [#allocation4]  }
  0x2f   :  { %170 = dma.done.wait [#allocation4], 1024  }
  0x30   :  { %171 = vsyncadd [#allocation4], 4294966272 }
  0x31   :  { %79 = vsyncpa [#allocation3], 1 }
  0x32   :  { %80 = vsyncpa [#allocation6], 1 }
  0x33   :  { %81 = vsyncpa [#allocation4], 1 }

</bundles_post_ra>
